<compile_context>
chip_gen: v5e
topology: v5e:2x2
jax: 0.10.0
libtpu: 0.0.40
codegen_flags: <defaults>
</compile_context>

<pallas_src>
import jax
import jax.numpy as jnp
from jax.experimental import pallas as pl
from jax.experimental.pallas import tpu as pltpu


def _round_up(x, m):
    return ((x + m - 1) // m) * m


def _scoring_kernel(x_ref, w1_ref, b1_ref, w2_ref, o_ref):
    # x_ref/o_ref: (tile_rows, tile_cols) f32 blocks in VMEM (lane+sublane dense)
    # w1_ref/b1_ref/w2_ref: (d_model,) f32 in SMEM (scalar splats are ~free on VPU)
    x = x_ref[...]
    d_model = w1_ref.shape[0]
    # Unrolled accumulator loop over the hidden dimension.
    acc = w2_ref[0] * jnp.maximum(w1_ref[0] * x + b1_ref[0], 0.0)
    for d in range(1, d_model):
        acc = acc + w2_ref[d] * jnp.maximum(w1_ref[d] * x + b1_ref[d], 0.0)
    o_ref[...] = acc


def scoring_layer(h, w1, b1, w2, *, tile_rows=32, tile_cols=1024):
    """h: (b, 1, l) float32.  Returns (b, l) float32.

    w1: (d_model, 1)  -- weight of Linear(1, d_model)
    b1: (d_model,)    -- bias  of Linear(1, d_model)
    w2: (1, d_model)  -- weight of Linear(d_model, 1, bias=False)
    """
    b, one, l = h.shape
    assert one == 1
    d_model = w1.shape[0]
    n = b * l

    # Adapt slab geometry: tiny inputs don't get padded to a huge tile, large
    # inputs get big (32 x 1024) = 32K-element lane+sublane-dense tiles.
    tile_cols = min(tile_cols, max(128, _round_up(pl.cdiv(n, 8), 128)))
    rows = pl.cdiv(n, tile_cols)
    tile_rows = min(tile_rows, max(8, _round_up(rows, 8)))
    rows_pad = _round_up(rows, tile_rows)
    n_pad = rows_pad * tile_cols

    x = h.reshape(-1).astype(jnp.float32)
    if n_pad != n:
        # Padded tail produces sum(w2*relu(b1)) in the extra region; it is
        # sliced off before returning, so results match the reference.
        x = jnp.pad(x, (0, n_pad - n))
    x = x.reshape(rows_pad, tile_cols)

    w1c = w1.reshape(d_model).astype(jnp.float32)
    b1c = b1.reshape(d_model).astype(jnp.float32)
    w2c = w2.reshape(d_model).astype(jnp.float32)

    grid = (rows_pad // tile_rows,)

    out = pl.pallas_call(
        _scoring_kernel,
        out_shape=jax.ShapeDtypeStruct((rows_pad, tile_cols), jnp.float32),
        grid_spec=pltpu.PrefetchScalarGridSpec(
            num_scalar_prefetch=0,
            grid=grid,
            in_specs=[
                pl.BlockSpec((tile_rows, tile_cols), lambda i: (i, 0)),     # x
                pl.BlockSpec(memory_space=pltpu.MemorySpace.SMEM),          # w1
                pl.BlockSpec(memory_space=pltpu.MemorySpace.SMEM),          # b1
                pl.BlockSpec(memory_space=pltpu.MemorySpace.SMEM),          # w2
            ],
            out_specs=pl.BlockSpec((tile_rows, tile_cols), lambda i: (i, 0)),
        ),
        compiler_params=pltpu.CompilerParams(
            dimension_semantics=("parallel",),
        ),
    )(x, w1c, b1c, w2c)

    return out.reshape(-1)[:n].reshape(b, l)


def scoring_layer_ref(h, w1, b1, w2):
    # pure-JAX reference matching the PyTorch module
    x = jnp.transpose(h, (0, 2, 1))                      # (b, l, 1)
    hid = jnp.maximum(x @ w1.T + b1, 0.0)                # (b, l, d_model)
    out = hid @ w2.T                                     # (b, l, 1)
    return out[..., 0]


if __name__ == "__main__":
    key = jax.random.PRNGKey(0)
    k_h, k_w1, k_b1, k_w2 = jax.random.split(key, 4)

    batch = 2
    seq = 200          # l (deliberately not a multiple of 128 to exercise padding)
    d_model = 32

    h = jax.random.normal(k_h, (batch, 1, seq), dtype=jnp.float32)
    # deterministic synthetic parameters (PyTorch Linear shapes)
    w1 = jax.random.normal(k_w1, (d_model, 1), dtype=jnp.float32) * 0.5
    b1 = jax.random.normal(k_b1, (d_model,), dtype=jnp.float32) * 0.1
    w2 = jax.random.normal(k_w2, (1, d_model), dtype=jnp.float32) * 0.5

    out = scoring_layer(h, w1, b1, w2)
    out = jax.block_until_ready(out)

    ref = scoring_layer_ref(h, w1, b1, w2)
    assert out.shape == (batch, seq)
    assert jnp.allclose(out, ref, atol=1e-5, rtol=1e-5), "mismatch vs reference"

    print("KERNEL_OK")
</pallas_src>

<mosaic_0001>
module attributes {stable_mosaic.version = 11 : i64} {
  func.func @_scoring_kernel(%arg0: i32, %arg1: memref<8x128xf32, #tpu.memory_space<vmem>>, %arg2: memref<32xf32, #tpu.memory_space<smem>>, %arg3: memref<32xf32, #tpu.memory_space<smem>>, %arg4: memref<32xf32, #tpu.memory_space<smem>>, %arg5: memref<8x128xf32, #tpu.memory_space<vmem>>) attributes {dimension_semantics = [#tpu.dimension_semantics<parallel>], iteration_bounds = array<i64: 1>, scalar_prefetch = 0 : i64, scratch_operands = 0 : i64, tpu.core_type = #tpu.core_type<tc>, window_params = [{transform_indices = @transform_0, window_bounds = array<i64: 8, 128>}, {transform_indices = @transform_1, window_bounds = array<i64: 32>}, {transform_indices = @transform_2, window_bounds = array<i64: 32>}, {transform_indices = @transform_3, window_bounds = array<i64: 32>}, {transform_indices = @transform_4, window_bounds = array<i64: 8, 128>}]} {
    %c0 = arith.constant 0 : index
    %c0_0 = arith.constant 0 : index
    %0 = vector.load %arg1[%c0, %c0_0] : memref<8x128xf32, #tpu.memory_space<vmem>>, vector<8x128xf32>
    %c0_1 = arith.constant 0 : index
    %1 = memref.load %arg4[%c0_1] : memref<32xf32, #tpu.memory_space<smem>>
    %c0_2 = arith.constant 0 : index
    %2 = memref.load %arg2[%c0_2] : memref<32xf32, #tpu.memory_space<smem>>
    %3 = vector.broadcast %2 : f32 to vector<8x128xf32>
    %4 = arith.mulf %3, %0 : vector<8x128xf32>
    %c0_3 = arith.constant 0 : index
    %5 = memref.load %arg3[%c0_3] : memref<32xf32, #tpu.memory_space<smem>>
    %6 = vector.broadcast %5 : f32 to vector<8x128xf32>
    %7 = arith.addf %4, %6 : vector<8x128xf32>
    %cst = arith.constant 0.000000e+00 : f32
    %8 = vector.broadcast %cst : f32 to vector<8x128xf32>
    %9 = arith.maximumf %7, %8 : vector<8x128xf32>
    %10 = vector.broadcast %1 : f32 to vector<8x128xf32>
    %11 = arith.mulf %10, %9 : vector<8x128xf32>
    %c1 = arith.constant 1 : index
    %12 = memref.load %arg4[%c1] : memref<32xf32, #tpu.memory_space<smem>>
    %c1_4 = arith.constant 1 : index
    %13 = memref.load %arg2[%c1_4] : memref<32xf32, #tpu.memory_space<smem>>
    %14 = vector.broadcast %13 : f32 to vector<8x128xf32>
    %15 = arith.mulf %14, %0 : vector<8x128xf32>
    %c1_5 = arith.constant 1 : index
    %16 = memref.load %arg3[%c1_5] : memref<32xf32, #tpu.memory_space<smem>>
    %17 = vector.broadcast %16 : f32 to vector<8x128xf32>
    %18 = arith.addf %15, %17 : vector<8x128xf32>
    %cst_6 = arith.constant 0.000000e+00 : f32
    %19 = vector.broadcast %cst_6 : f32 to vector<8x128xf32>
    %20 = arith.maximumf %18, %19 : vector<8x128xf32>
    %21 = vector.broadcast %12 : f32 to vector<8x128xf32>
    %22 = arith.mulf %21, %20 : vector<8x128xf32>
    %23 = arith.addf %11, %22 : vector<8x128xf32>
    %c2 = arith.constant 2 : index
    %24 = memref.load %arg4[%c2] : memref<32xf32, #tpu.memory_space<smem>>
    %c2_7 = arith.constant 2 : index
    %25 = memref.load %arg2[%c2_7] : memref<32xf32, #tpu.memory_space<smem>>
    %26 = vector.broadcast %25 : f32 to vector<8x128xf32>
    %27 = arith.mulf %26, %0 : vector<8x128xf32>
    %c2_8 = arith.constant 2 : index
    %28 = memref.load %arg3[%c2_8] : memref<32xf32, #tpu.memory_space<smem>>
    %29 = vector.broadcast %28 : f32 to vector<8x128xf32>
    %30 = arith.addf %27, %29 : vector<8x128xf32>
    %cst_9 = arith.constant 0.000000e+00 : f32
    %31 = vector.broadcast %cst_9 : f32 to vector<8x128xf32>
    %32 = arith.maximumf %30, %31 : vector<8x128xf32>
    %33 = vector.broadcast %24 : f32 to vector<8x128xf32>
    %34 = arith.mulf %33, %32 : vector<8x128xf32>
    %35 = arith.addf %23, %34 : vector<8x128xf32>
    %c3 = arith.constant 3 : index
    %36 = memref.load %arg4[%c3] : memref<32xf32, #tpu.memory_space<smem>>
    %c3_10 = arith.constant 3 : index
    %37 = memref.load %arg2[%c3_10] : memref<32xf32, #tpu.memory_space<smem>>
    %38 = vector.broadcast %37 : f32 to vector<8x128xf32>
    %39 = arith.mulf %38, %0 : vector<8x128xf32>
    %c3_11 = arith.constant 3 : index
    %40 = memref.load %arg3[%c3_11] : memref<32xf32, #tpu.memory_space<smem>>
    %41 = vector.broadcast %40 : f32 to vector<8x128xf32>
    %42 = arith.addf %39, %41 : vector<8x128xf32>
    %cst_12 = arith.constant 0.000000e+00 : f32
    %43 = vector.broadcast %cst_12 : f32 to vector<8x128xf32>
    %44 = arith.maximumf %42, %43 : vector<8x128xf32>
    %45 = vector.broadcast %36 : f32 to vector<8x128xf32>
    %46 = arith.mulf %45, %44 : vector<8x128xf32>
    %47 = arith.addf %35, %46 : vector<8x128xf32>
    %c4 = arith.constant 4 : index
    %48 = memref.load %arg4[%c4] : memref<32xf32, #tpu.memory_space<smem>>
    %c4_13 = arith.constant 4 : index
    %49 = memref.load %arg2[%c4_13] : memref<32xf32, #tpu.memory_space<smem>>
    %50 = vector.broadcast %49 : f32 to vector<8x128xf32>
    %51 = arith.mulf %50, %0 : vector<8x128xf32>
    %c4_14 = arith.constant 4 : index
    %52 = memref.load %arg3[%c4_14] : memref<32xf32, #tpu.memory_space<smem>>
    %53 = vector.broadcast %52 : f32 to vector<8x128xf32>
    %54 = arith.addf %51, %53 : vector<8x128xf32>
    %cst_15 = arith.constant 0.000000e+00 : f32
    %55 = vector.broadcast %cst_15 : f32 to vector<8x128xf32>
    %56 = arith.maximumf %54, %55 : vector<8x128xf32>
    %57 = vector.broadcast %48 : f32 to vector<8x128xf32>
    %58 = arith.mulf %57, %56 : vector<8x128xf32>
    %59 = arith.addf %47, %58 : vector<8x128xf32>
    %c5 = arith.constant 5 : index
    %60 = memref.load %arg4[%c5] : memref<32xf32, #tpu.memory_space<smem>>
    %c5_16 = arith.constant 5 : index
    %61 = memref.load %arg2[%c5_16] : memref<32xf32, #tpu.memory_space<smem>>
    %62 = vector.broadcast %61 : f32 to vector<8x128xf32>
    %63 = arith.mulf %62, %0 : vector<8x128xf32>
    %c5_17 = arith.constant 5 : index
    %64 = memref.load %arg3[%c5_17] : memref<32xf32, #tpu.memory_space<smem>>
    %65 = vector.broadcast %64 : f32 to vector<8x128xf32>
    %66 = arith.addf %63, %65 : vector<8x128xf32>
    %cst_18 = arith.constant 0.000000e+00 : f32
    %67 = vector.broadcast %cst_18 : f32 to vector<8x128xf32>
    %68 = arith.maximumf %66, %67 : vector<8x128xf32>
    %69 = vector.broadcast %60 : f32 to vector<8x128xf32>
    %70 = arith.mulf %69, %68 : vector<8x128xf32>
    %71 = arith.addf %59, %70 : vector<8x128xf32>
    %c6 = arith.constant 6 : index
    %72 = memref.load %arg4[%c6] : memref<32xf32, #tpu.memory_space<smem>>
    %c6_19 = arith.constant 6 : index
    %73 = memref.load %arg2[%c6_19] : memref<32xf32, #tpu.memory_space<smem>>
    %74 = vector.broadcast %73 : f32 to vector<8x128xf32>
    %75 = arith.mulf %74, %0 : vector<8x128xf32>
    %c6_20 = arith.constant 6 : index
    %76 = memref.load %arg3[%c6_20] : memref<32xf32, #tpu.memory_space<smem>>
    %77 = vector.broadcast %76 : f32 to vector<8x128xf32>
    %78 = arith.addf %75, %77 : vector<8x128xf32>
    %cst_21 = arith.constant 0.000000e+00 : f32
    %79 = vector.broadcast %cst_21 : f32 to vector<8x128xf32>
    %80 = arith.maximumf %78, %79 : vector<8x128xf32>
    %81 = vector.broadcast %72 : f32 to vector<8x128xf32>
    %82 = arith.mulf %81, %80 : vector<8x128xf32>
    %83 = arith.addf %71, %82 : vector<8x128xf32>
    %c7 = arith.constant 7 : index
    %84 = memref.load %arg4[%c7] : memref<32xf32, #tpu.memory_space<smem>>
    %c7_22 = arith.constant 7 : index
    %85 = memref.load %arg2[%c7_22] : memref<32xf32, #tpu.memory_space<smem>>
    %86 = vector.broadcast %85 : f32 to vector<8x128xf32>
    %87 = arith.mulf %86, %0 : vector<8x128xf32>
    %c7_23 = arith.constant 7 : index
    %88 = memref.load %arg3[%c7_23] : memref<32xf32, #tpu.memory_space<smem>>
    %89 = vector.broadcast %88 : f32 to vector<8x128xf32>
    %90 = arith.addf %87, %89 : vector<8x128xf32>
    %cst_24 = arith.constant 0.000000e+00 : f32
    %91 = vector.broadcast %cst_24 : f32 to vector<8x128xf32>
    %92 = arith.maximumf %90, %91 : vector<8x128xf32>
    %93 = vector.broadcast %84 : f32 to vector<8x128xf32>
    %94 = arith.mulf %93, %92 : vector<8x128xf32>
    %95 = arith.addf %83, %94 : vector<8x128xf32>
    %c8 = arith.constant 8 : index
    %96 = memref.load %arg4[%c8] : memref<32xf32, #tpu.memory_space<smem>>
    %c8_25 = arith.constant 8 : index
    %97 = memref.load %arg2[%c8_25] : memref<32xf32, #tpu.memory_space<smem>>
    %98 = vector.broadcast %97 : f32 to vector<8x128xf32>
    %99 = arith.mulf %98, %0 : vector<8x128xf32>
    %c8_26 = arith.constant 8 : index
    %100 = memref.load %arg3[%c8_26] : memref<32xf32, #tpu.memory_space<smem>>
    %101 = vector.broadcast %100 : f32 to vector<8x128xf32>
    %102 = arith.addf %99, %101 : vector<8x128xf32>
    %cst_27 = arith.constant 0.000000e+00 : f32
    %103 = vector.broadcast %cst_27 : f32 to vector<8x128xf32>
    %104 = arith.maximumf %102, %103 : vector<8x128xf32>
    %105 = vector.broadcast %96 : f32 to vector<8x128xf32>
    %106 = arith.mulf %105, %104 : vector<8x128xf32>
    %107 = arith.addf %95, %106 : vector<8x128xf32>
    %c9 = arith.constant 9 : index
    %108 = memref.load %arg4[%c9] : memref<32xf32, #tpu.memory_space<smem>>
    %c9_28 = arith.constant 9 : index
    %109 = memref.load %arg2[%c9_28] : memref<32xf32, #tpu.memory_space<smem>>
    %110 = vector.broadcast %109 : f32 to vector<8x128xf32>
    %111 = arith.mulf %110, %0 : vector<8x128xf32>
    %c9_29 = arith.constant 9 : index
    %112 = memref.load %arg3[%c9_29] : memref<32xf32, #tpu.memory_space<smem>>
    %113 = vector.broadcast %112 : f32 to vector<8x128xf32>
    %114 = arith.addf %111, %113 : vector<8x128xf32>
    %cst_30 = arith.constant 0.000000e+00 : f32
    %115 = vector.broadcast %cst_30 : f32 to vector<8x128xf32>
    %116 = arith.maximumf %114, %115 : vector<8x128xf32>
    %117 = vector.broadcast %108 : f32 to vector<8x128xf32>
    %118 = arith.mulf %117, %116 : vector<8x128xf32>
    %119 = arith.addf %107, %118 : vector<8x128xf32>
    %c10 = arith.constant 10 : index
    %120 = memref.load %arg4[%c10] : memref<32xf32, #tpu.memory_space<smem>>
    %c10_31 = arith.constant 10 : index
    %121 = memref.load %arg2[%c10_31] : memref<32xf32, #tpu.memory_space<smem>>
    %122 = vector.broadcast %121 : f32 to vector<8x128xf32>
    %123 = arith.mulf %122, %0 : vector<8x128xf32>
    %c10_32 = arith.constant 10 : index
    %124 = memref.load %arg3[%c10_32] : memref<32xf32, #tpu.memory_space<smem>>
    %125 = vector.broadcast %124 : f32 to vector<8x128xf32>
    %126 = arith.addf %123, %125 : vector<8x128xf32>
    %cst_33 = arith.constant 0.000000e+00 : f32
    %127 = vector.broadcast %cst_33 : f32 to vector<8x128xf32>
    %128 = arith.maximumf %126, %127 : vector<8x128xf32>
    %129 = vector.broadcast %120 : f32 to vector<8x128xf32>
    %130 = arith.mulf %129, %128 : vector<8x128xf32>
    %131 = arith.addf %119, %130 : vector<8x128xf32>
    %c11 = arith.constant 11 : index
    %132 = memref.load %arg4[%c11] : memref<32xf32, #tpu.memory_space<smem>>
    %c11_34 = arith.constant 11 : index
    %133 = memref.load %arg2[%c11_34] : memref<32xf32, #tpu.memory_space<smem>>
    %134 = vector.broadcast %133 : f32 to vector<8x128xf32>
    %135 = arith.mulf %134, %0 : vector<8x128xf32>
    %c11_35 = arith.constant 11 : index
    %136 = memref.load %arg3[%c11_35] : memref<32xf32, #tpu.memory_space<smem>>
    %137 = vector.broadcast %136 : f32 to vector<8x128xf32>
    %138 = arith.addf %135, %137 : vector<8x128xf32>
    %cst_36 = arith.constant 0.000000e+00 : f32
    %139 = vector.broadcast %cst_36 : f32 to vector<8x128xf32>
    %140 = arith.maximumf %138, %139 : vector<8x128xf32>
    %141 = vector.broadcast %132 : f32 to vector<8x128xf32>
    %142 = arith.mulf %141, %140 : vector<8x128xf32>
    %143 = arith.addf %131, %142 : vector<8x128xf32>
    %c12 = arith.constant 12 : index
    %144 = memref.load %arg4[%c12] : memref<32xf32, #tpu.memory_space<smem>>
    %c12_37 = arith.constant 12 : index
    %145 = memref.load %arg2[%c12_37] : memref<32xf32, #tpu.memory_space<smem>>
    %146 = vector.broadcast %145 : f32 to vector<8x128xf32>
    %147 = arith.mulf %146, %0 : vector<8x128xf32>
    %c12_38 = arith.constant 12 : index
    %148 = memref.load %arg3[%c12_38] : memref<32xf32, #tpu.memory_space<smem>>
    %149 = vector.broadcast %148 : f32 to vector<8x128xf32>
    %150 = arith.addf %147, %149 : vector<8x128xf32>
    %cst_39 = arith.constant 0.000000e+00 : f32
    %151 = vector.broadcast %cst_39 : f32 to vector<8x128xf32>
    %152 = arith.maximumf %150, %151 : vector<8x128xf32>
    %153 = vector.broadcast %144 : f32 to vector<8x128xf32>
    %154 = arith.mulf %153, %152 : vector<8x128xf32>
    %155 = arith.addf %143, %154 : vector<8x128xf32>
    %c13 = arith.constant 13 : index
    %156 = memref.load %arg4[%c13] : memref<32xf32, #tpu.memory_space<smem>>
    %c13_40 = arith.constant 13 : index
    %157 = memref.load %arg2[%c13_40] : memref<32xf32, #tpu.memory_space<smem>>
    %158 = vector.broadcast %157 : f32 to vector<8x128xf32>
    %159 = arith.mulf %158, %0 : vector<8x128xf32>
    %c13_41 = arith.constant 13 : index
    %160 = memref.load %arg3[%c13_41] : memref<32xf32, #tpu.memory_space<smem>>
    %161 = vector.broadcast %160 : f32 to vector<8x128xf32>
    %162 = arith.addf %159, %161 : vector<8x128xf32>
    %cst_42 = arith.constant 0.000000e+00 : f32
    %163 = vector.broadcast %cst_42 : f32 to vector<8x128xf32>
    %164 = arith.maximumf %162, %163 : vector<8x128xf32>
    %165 = vector.broadcast %156 : f32 to vector<8x128xf32>
    %166 = arith.mulf %165, %164 : vector<8x128xf32>
    %167 = arith.addf %155, %166 : vector<8x128xf32>
    %c14 = arith.constant 14 : index
    %168 = memref.load %arg4[%c14] : memref<32xf32, #tpu.memory_space<smem>>
    %c14_43 = arith.constant 14 : index
    %169 = memref.load %arg2[%c14_43] : memref<32xf32, #tpu.memory_space<smem>>
    %170 = vector.broadcast %169 : f32 to vector<8x128xf32>
    %171 = arith.mulf %170, %0 : vector<8x128xf32>
    %c14_44 = arith.constant 14 : index
    %172 = memref.load %arg3[%c14_44] : memref<32xf32, #tpu.memory_space<smem>>
    %173 = vector.broadcast %172 : f32 to vector<8x128xf32>
    %174 = arith.addf %171, %173 : vector<8x128xf32>
    %cst_45 = arith.constant 0.000000e+00 : f32
    %175 = vector.broadcast %cst_45 : f32 to vector<8x128xf32>
    %176 = arith.maximumf %174, %175 : vector<8x128xf32>
    %177 = vector.broadcast %168 : f32 to vector<8x128xf32>
    %178 = arith.mulf %177, %176 : vector<8x128xf32>
    %179 = arith.addf %167, %178 : vector<8x128xf32>
    %c15 = arith.constant 15 : index
    %180 = memref.load %arg4[%c15] : memref<32xf32, #tpu.memory_space<smem>>
    %c15_46 = arith.constant 15 : index
    %181 = memref.load %arg2[%c15_46] : memref<32xf32, #tpu.memory_space<smem>>
    %182 = vector.broadcast %181 : f32 to vector<8x128xf32>
    %183 = arith.mulf %182, %0 : vector<8x128xf32>
    %c15_47 = arith.constant 15 : index
    %184 = memref.load %arg3[%c15_47] : memref<32xf32, #tpu.memory_space<smem>>
    %185 = vector.broadcast %184 : f32 to vector<8x128xf32>
    %186 = arith.addf %183, %185 : vector<8x128xf32>
    %cst_48 = arith.constant 0.000000e+00 : f32
    %187 = vector.broadcast %cst_48 : f32 to vector<8x128xf32>
    %188 = arith.maximumf %186, %187 : vector<8x128xf32>
    %189 = vector.broadcast %180 : f32 to vector<8x128xf32>
    %190 = arith.mulf %189, %188 : vector<8x128xf32>
    %191 = arith.addf %179, %190 : vector<8x128xf32>
    %c16 = arith.constant 16 : index
    %192 = memref.load %arg4[%c16] : memref<32xf32, #tpu.memory_space<smem>>
    %c16_49 = arith.constant 16 : index
    %193 = memref.load %arg2[%c16_49] : memref<32xf32, #tpu.memory_space<smem>>
    %194 = vector.broadcast %193 : f32 to vector<8x128xf32>
    %195 = arith.mulf %194, %0 : vector<8x128xf32>
    %c16_50 = arith.constant 16 : index
    %196 = memref.load %arg3[%c16_50] : memref<32xf32, #tpu.memory_space<smem>>
    %197 = vector.broadcast %196 : f32 to vector<8x128xf32>
    %198 = arith.addf %195, %197 : vector<8x128xf32>
    %cst_51 = arith.constant 0.000000e+00 : f32
    %199 = vector.broadcast %cst_51 : f32 to vector<8x128xf32>
    %200 = arith.maximumf %198, %199 : vector<8x128xf32>
    %201 = vector.broadcast %192 : f32 to vector<8x128xf32>
    %202 = arith.mulf %201, %200 : vector<8x128xf32>
    %203 = arith.addf %191, %202 : vector<8x128xf32>
    %c17 = arith.constant 17 : index
    %204 = memref.load %arg4[%c17] : memref<32xf32, #tpu.memory_space<smem>>
    %c17_52 = arith.constant 17 : index
    %205 = memref.load %arg2[%c17_52] : memref<32xf32, #tpu.memory_space<smem>>
    %206 = vector.broadcast %205 : f32 to vector<8x128xf32>
    %207 = arith.mulf %206, %0 : vector<8x128xf32>
    %c17_53 = arith.constant 17 : index
    %208 = memref.load %arg3[%c17_53] : memref<32xf32, #tpu.memory_space<smem>>
    %209 = vector.broadcast %208 : f32 to vector<8x128xf32>
    %210 = arith.addf %207, %209 : vector<8x128xf32>
    %cst_54 = arith.constant 0.000000e+00 : f32
    %211 = vector.broadcast %cst_54 : f32 to vector<8x128xf32>
    %212 = arith.maximumf %210, %211 : vector<8x128xf32>
    %213 = vector.broadcast %204 : f32 to vector<8x128xf32>
    %214 = arith.mulf %213, %212 : vector<8x128xf32>
    %215 = arith.addf %203, %214 : vector<8x128xf32>
    %c18 = arith.constant 18 : index
    %216 = memref.load %arg4[%c18] : memref<32xf32, #tpu.memory_space<smem>>
    %c18_55 = arith.constant 18 : index
    %217 = memref.load %arg2[%c18_55] : memref<32xf32, #tpu.memory_space<smem>>
    %218 = vector.broadcast %217 : f32 to vector<8x128xf32>
    %219 = arith.mulf %218, %0 : vector<8x128xf32>
    %c18_56 = arith.constant 18 : index
    %220 = memref.load %arg3[%c18_56] : memref<32xf32, #tpu.memory_space<smem>>
    %221 = vector.broadcast %220 : f32 to vector<8x128xf32>
    %222 = arith.addf %219, %221 : vector<8x128xf32>
    %cst_57 = arith.constant 0.000000e+00 : f32
    %223 = vector.broadcast %cst_57 : f32 to vector<8x128xf32>
    %224 = arith.maximumf %222, %223 : vector<8x128xf32>
    %225 = vector.broadcast %216 : f32 to vector<8x128xf32>
    %226 = arith.mulf %225, %224 : vector<8x128xf32>
    %227 = arith.addf %215, %226 : vector<8x128xf32>
    %c19 = arith.constant 19 : index
    %228 = memref.load %arg4[%c19] : memref<32xf32, #tpu.memory_space<smem>>
    %c19_58 = arith.constant 19 : index
    %229 = memref.load %arg2[%c19_58] : memref<32xf32, #tpu.memory_space<smem>>
    %230 = vector.broadcast %229 : f32 to vector<8x128xf32>
    %231 = arith.mulf %230, %0 : vector<8x128xf32>
    %c19_59 = arith.constant 19 : index
    %232 = memref.load %arg3[%c19_59] : memref<32xf32, #tpu.memory_space<smem>>
    %233 = vector.broadcast %232 : f32 to vector<8x128xf32>
    %234 = arith.addf %231, %233 : vector<8x128xf32>
    %cst_60 = arith.constant 0.000000e+00 : f32
    %235 = vector.broadcast %cst_60 : f32 to vector<8x128xf32>
    %236 = arith.maximumf %234, %235 : vector<8x128xf32>
    %237 = vector.broadcast %228 : f32 to vector<8x128xf32>
    %238 = arith.mulf %237, %236 : vector<8x128xf32>
    %239 = arith.addf %227, %238 : vector<8x128xf32>
    %c20 = arith.constant 20 : index
    %240 = memref.load %arg4[%c20] : memref<32xf32, #tpu.memory_space<smem>>
    %c20_61 = arith.constant 20 : index
    %241 = memref.load %arg2[%c20_61] : memref<32xf32, #tpu.memory_space<smem>>
    %242 = vector.broadcast %241 : f32 to vector<8x128xf32>
    %243 = arith.mulf %242, %0 : vector<8x128xf32>
    %c20_62 = arith.constant 20 : index
    %244 = memref.load %arg3[%c20_62] : memref<32xf32, #tpu.memory_space<smem>>
    %245 = vector.broadcast %244 : f32 to vector<8x128xf32>
    %246 = arith.addf %243, %245 : vector<8x128xf32>
    %cst_63 = arith.constant 0.000000e+00 : f32
    %247 = vector.broadcast %cst_63 : f32 to vector<8x128xf32>
    %248 = arith.maximumf %246, %247 : vector<8x128xf32>
    %249 = vector.broadcast %240 : f32 to vector<8x128xf32>
    %250 = arith.mulf %249, %248 : vector<8x128xf32>
    %251 = arith.addf %239, %250 : vector<8x128xf32>
    %c21 = arith.constant 21 : index
    %252 = memref.load %arg4[%c21] : memref<32xf32, #tpu.memory_space<smem>>
    %c21_64 = arith.constant 21 : index
    %253 = memref.load %arg2[%c21_64] : memref<32xf32, #tpu.memory_space<smem>>
    %254 = vector.broadcast %253 : f32 to vector<8x128xf32>
    %255 = arith.mulf %254, %0 : vector<8x128xf32>
    %c21_65 = arith.constant 21 : index
    %256 = memref.load %arg3[%c21_65] : memref<32xf32, #tpu.memory_space<smem>>
    %257 = vector.broadcast %256 : f32 to vector<8x128xf32>
    %258 = arith.addf %255, %257 : vector<8x128xf32>
    %cst_66 = arith.constant 0.000000e+00 : f32
    %259 = vector.broadcast %cst_66 : f32 to vector<8x128xf32>
    %260 = arith.maximumf %258, %259 : vector<8x128xf32>
    %261 = vector.broadcast %252 : f32 to vector<8x128xf32>
    %262 = arith.mulf %261, %260 : vector<8x128xf32>
    %263 = arith.addf %251, %262 : vector<8x128xf32>
    %c22 = arith.constant 22 : index
    %264 = memref.load %arg4[%c22] : memref<32xf32, #tpu.memory_space<smem>>
    %c22_67 = arith.constant 22 : index
    %265 = memref.load %arg2[%c22_67] : memref<32xf32, #tpu.memory_space<smem>>
    %266 = vector.broadcast %265 : f32 to vector<8x128xf32>
    %267 = arith.mulf %266, %0 : vector<8x128xf32>
    %c22_68 = arith.constant 22 : index
    %268 = memref.load %arg3[%c22_68] : memref<32xf32, #tpu.memory_space<smem>>
    %269 = vector.broadcast %268 : f32 to vector<8x128xf32>
    %270 = arith.addf %267, %269 : vector<8x128xf32>
    %cst_69 = arith.constant 0.000000e+00 : f32
    %271 = vector.broadcast %cst_69 : f32 to vector<8x128xf32>
    %272 = arith.maximumf %270, %271 : vector<8x128xf32>
    %273 = vector.broadcast %264 : f32 to vector<8x128xf32>
    %274 = arith.mulf %273, %272 : vector<8x128xf32>
    %275 = arith.addf %263, %274 : vector<8x128xf32>
    %c23 = arith.constant 23 : index
    %276 = memref.load %arg4[%c23] : memref<32xf32, #tpu.memory_space<smem>>
    %c23_70 = arith.constant 23 : index
    %277 = memref.load %arg2[%c23_70] : memref<32xf32, #tpu.memory_space<smem>>
    %278 = vector.broadcast %277 : f32 to vector<8x128xf32>
    %279 = arith.mulf %278, %0 : vector<8x128xf32>
    %c23_71 = arith.constant 23 : index
    %280 = memref.load %arg3[%c23_71] : memref<32xf32, #tpu.memory_space<smem>>
    %281 = vector.broadcast %280 : f32 to vector<8x128xf32>
    %282 = arith.addf %279, %281 : vector<8x128xf32>
    %cst_72 = arith.constant 0.000000e+00 : f32
    %283 = vector.broadcast %cst_72 : f32 to vector<8x128xf32>
    %284 = arith.maximumf %282, %283 : vector<8x128xf32>
    %285 = vector.broadcast %276 : f32 to vector<8x128xf32>
    %286 = arith.mulf %285, %284 : vector<8x128xf32>
    %287 = arith.addf %275, %286 : vector<8x128xf32>
    %c24 = arith.constant 24 : index
    %288 = memref.load %arg4[%c24] : memref<32xf32, #tpu.memory_space<smem>>
    %c24_73 = arith.constant 24 : index
    %289 = memref.load %arg2[%c24_73] : memref<32xf32, #tpu.memory_space<smem>>
    %290 = vector.broadcast %289 : f32 to vector<8x128xf32>
    %291 = arith.mulf %290, %0 : vector<8x128xf32>
    %c24_74 = arith.constant 24 : index
    %292 = memref.load %arg3[%c24_74] : memref<32xf32, #tpu.memory_space<smem>>
    %293 = vector.broadcast %292 : f32 to vector<8x128xf32>
    %294 = arith.addf %291, %293 : vector<8x128xf32>
    %cst_75 = arith.constant 0.000000e+00 : f32
    %295 = vector.broadcast %cst_75 : f32 to vector<8x128xf32>
    %296 = arith.maximumf %294, %295 : vector<8x128xf32>
    %297 = vector.broadcast %288 : f32 to vector<8x128xf32>
    %298 = arith.mulf %297, %296 : vector<8x128xf32>
    %299 = arith.addf %287, %298 : vector<8x128xf32>
    %c25 = arith.constant 25 : index
    %300 = memref.load %arg4[%c25] : memref<32xf32, #tpu.memory_space<smem>>
    %c25_76 = arith.constant 25 : index
    %301 = memref.load %arg2[%c25_76] : memref<32xf32, #tpu.memory_space<smem>>
    %302 = vector.broadcast %301 : f32 to vector<8x128xf32>
    %303 = arith.mulf %302, %0 : vector<8x128xf32>
    %c25_77 = arith.constant 25 : index
    %304 = memref.load %arg3[%c25_77] : memref<32xf32, #tpu.memory_space<smem>>
    %305 = vector.broadcast %304 : f32 to vector<8x128xf32>
    %306 = arith.addf %303, %305 : vector<8x128xf32>
    %cst_78 = arith.constant 0.000000e+00 : f32
    %307 = vector.broadcast %cst_78 : f32 to vector<8x128xf32>
    %308 = arith.maximumf %306, %307 : vector<8x128xf32>
    %309 = vector.broadcast %300 : f32 to vector<8x128xf32>
    %310 = arith.mulf %309, %308 : vector<8x128xf32>
    %311 = arith.addf %299, %310 : vector<8x128xf32>
    %c26 = arith.constant 26 : index
    %312 = memref.load %arg4[%c26] : memref<32xf32, #tpu.memory_space<smem>>
    %c26_79 = arith.constant 26 : index
    %313 = memref.load %arg2[%c26_79] : memref<32xf32, #tpu.memory_space<smem>>
    %314 = vector.broadcast %313 : f32 to vector<8x128xf32>
    %315 = arith.mulf %314, %0 : vector<8x128xf32>
    %c26_80 = arith.constant 26 : index
    %316 = memref.load %arg3[%c26_80] : memref<32xf32, #tpu.memory_space<smem>>
    %317 = vector.broadcast %316 : f32 to vector<8x128xf32>
    %318 = arith.addf %315, %317 : vector<8x128xf32>
    %cst_81 = arith.constant 0.000000e+00 : f32
    %319 = vector.broadcast %cst_81 : f32 to vector<8x128xf32>
    %320 = arith.maximumf %318, %319 : vector<8x128xf32>
    %321 = vector.broadcast %312 : f32 to vector<8x128xf32>
    %322 = arith.mulf %321, %320 : vector<8x128xf32>
    %323 = arith.addf %311, %322 : vector<8x128xf32>
    %c27 = arith.constant 27 : index
    %324 = memref.load %arg4[%c27] : memref<32xf32, #tpu.memory_space<smem>>
    %c27_82 = arith.constant 27 : index
    %325 = memref.load %arg2[%c27_82] : memref<32xf32, #tpu.memory_space<smem>>
    %326 = vector.broadcast %325 : f32 to vector<8x128xf32>
    %327 = arith.mulf %326, %0 : vector<8x128xf32>
    %c27_83 = arith.constant 27 : index
    %328 = memref.load %arg3[%c27_83] : memref<32xf32, #tpu.memory_space<smem>>
    %329 = vector.broadcast %328 : f32 to vector<8x128xf32>
    %330 = arith.addf %327, %329 : vector<8x128xf32>
    %cst_84 = arith.constant 0.000000e+00 : f32
    %331 = vector.broadcast %cst_84 : f32 to vector<8x128xf32>
    %332 = arith.maximumf %330, %331 : vector<8x128xf32>
    %333 = vector.broadcast %324 : f32 to vector<8x128xf32>
    %334 = arith.mulf %333, %332 : vector<8x128xf32>
    %335 = arith.addf %323, %334 : vector<8x128xf32>
    %c28 = arith.constant 28 : index
    %336 = memref.load %arg4[%c28] : memref<32xf32, #tpu.memory_space<smem>>
    %c28_85 = arith.constant 28 : index
    %337 = memref.load %arg2[%c28_85] : memref<32xf32, #tpu.memory_space<smem>>
    %338 = vector.broadcast %337 : f32 to vector<8x128xf32>
    %339 = arith.mulf %338, %0 : vector<8x128xf32>
    %c28_86 = arith.constant 28 : index
    %340 = memref.load %arg3[%c28_86] : memref<32xf32, #tpu.memory_space<smem>>
    %341 = vector.broadcast %340 : f32 to vector<8x128xf32>
    %342 = arith.addf %339, %341 : vector<8x128xf32>
    %cst_87 = arith.constant 0.000000e+00 : f32
    %343 = vector.broadcast %cst_87 : f32 to vector<8x128xf32>
    %344 = arith.maximumf %342, %343 : vector<8x128xf32>
    %345 = vector.broadcast %336 : f32 to vector<8x128xf32>
    %346 = arith.mulf %345, %344 : vector<8x128xf32>
    %347 = arith.addf %335, %346 : vector<8x128xf32>
    %c29 = arith.constant 29 : index
    %348 = memref.load %arg4[%c29] : memref<32xf32, #tpu.memory_space<smem>>
    %c29_88 = arith.constant 29 : index
    %349 = memref.load %arg2[%c29_88] : memref<32xf32, #tpu.memory_space<smem>>
    %350 = vector.broadcast %349 : f32 to vector<8x128xf32>
    %351 = arith.mulf %350, %0 : vector<8x128xf32>
    %c29_89 = arith.constant 29 : index
    %352 = memref.load %arg3[%c29_89] : memref<32xf32, #tpu.memory_space<smem>>
    %353 = vector.broadcast %352 : f32 to vector<8x128xf32>
    %354 = arith.addf %351, %353 : vector<8x128xf32>
    %cst_90 = arith.constant 0.000000e+00 : f32
    %355 = vector.broadcast %cst_90 : f32 to vector<8x128xf32>
    %356 = arith.maximumf %354, %355 : vector<8x128xf32>
    %357 = vector.broadcast %348 : f32 to vector<8x128xf32>
    %358 = arith.mulf %357, %356 : vector<8x128xf32>
    %359 = arith.addf %347, %358 : vector<8x128xf32>
    %c30 = arith.constant 30 : index
    %360 = memref.load %arg4[%c30] : memref<32xf32, #tpu.memory_space<smem>>
    %c30_91 = arith.constant 30 : index
    %361 = memref.load %arg2[%c30_91] : memref<32xf32, #tpu.memory_space<smem>>
    %362 = vector.broadcast %361 : f32 to vector<8x128xf32>
    %363 = arith.mulf %362, %0 : vector<8x128xf32>
    %c30_92 = arith.constant 30 : index
    %364 = memref.load %arg3[%c30_92] : memref<32xf32, #tpu.memory_space<smem>>
    %365 = vector.broadcast %364 : f32 to vector<8x128xf32>
    %366 = arith.addf %363, %365 : vector<8x128xf32>
    %cst_93 = arith.constant 0.000000e+00 : f32
    %367 = vector.broadcast %cst_93 : f32 to vector<8x128xf32>
    %368 = arith.maximumf %366, %367 : vector<8x128xf32>
    %369 = vector.broadcast %360 : f32 to vector<8x128xf32>
    %370 = arith.mulf %369, %368 : vector<8x128xf32>
    %371 = arith.addf %359, %370 : vector<8x128xf32>
    %c31 = arith.constant 31 : index
    %372 = memref.load %arg4[%c31] : memref<32xf32, #tpu.memory_space<smem>>
    %c31_94 = arith.constant 31 : index
    %373 = memref.load %arg2[%c31_94] : memref<32xf32, #tpu.memory_space<smem>>
    %374 = vector.broadcast %373 : f32 to vector<8x128xf32>
    %375 = arith.mulf %374, %0 : vector<8x128xf32>
    %c31_95 = arith.constant 31 : index
    %376 = memref.load %arg3[%c31_95] : memref<32xf32, #tpu.memory_space<smem>>
    %377 = vector.broadcast %376 : f32 to vector<8x128xf32>
    %378 = arith.addf %375, %377 : vector<8x128xf32>
    %cst_96 = arith.constant 0.000000e+00 : f32
    %379 = vector.broadcast %cst_96 : f32 to vector<8x128xf32>
    %380 = arith.maximumf %378, %379 : vector<8x128xf32>
    %381 = vector.broadcast %372 : f32 to vector<8x128xf32>
    %382 = arith.mulf %381, %380 : vector<8x128xf32>
    %383 = arith.addf %371, %382 : vector<8x128xf32>
    %c0_97 = arith.constant 0 : index
    %c0_98 = arith.constant 0 : index
    %384 = vector.load %arg5[%c0_97, %c0_98] : memref<8x128xf32, #tpu.memory_space<vmem>>, vector<8x128xf32>
    tpu.vector_store %arg5[%c0_97, %c0_98], %383 {strides = array<i32>} : memref<8x128xf32, #tpu.memory_space<vmem>>, vector<8x128xf32>,
    return
  }
  func.func @transform_0(%arg0: i32) -> (i32, i32) {
    %c0_i32 = arith.constant 0 : i32
    %c0_i32_0 = arith.constant 0 : i32
    return %arg0, %c0_i32 : i32, i32
  }
  func.func @transform_1(%arg0: i32) -> i32 {
    %c0_i32 = arith.constant 0 : i32
    %c0_i32_0 = arith.constant 0 : i32
    return %c0_i32 : i32
  }
  func.func @transform_2(%arg0: i32) -> i32 {
    %c0_i32 = arith.constant 0 : i32
    %c0_i32_0 = arith.constant 0 : i32
    return %c0_i32 : i32
  }
  func.func @transform_3(%arg0: i32) -> i32 {
    %c0_i32 = arith.constant 0 : i32
    %c0_i32_0 = arith.constant 0 : i32
    return %c0_i32 : i32
  }
  func.func @transform_4(%arg0: i32) -> (i32, i32) {
    %c0_i32 = arith.constant 0 : i32
    %c0_i32_0 = arith.constant 0 : i32
    return %arg0, %c0_i32 : i32, i32
  }
}

</mosaic_0001>

<bundles_post_ra>
// kernel: tpu_custom_call.1
= control target key start
LH: loop header
LB: loop body
LE: loop exit
PB: predicated region body
PF: predicated region fallthrough
CT: control target
= control target key end

     0   :  { %9 = vsyncpa [#allocation3], 0  ;;  %s797_s0 = inlined_call_operand.hbm [shape: f32[8,128], index: 0, kind: input, shape index: {}]   ;;  %s798_s1 = inlined_call_operand.hbm [shape: f32[32], index: 1, kind: input, shape index: {}]   ;;  %s799_s2 = inlined_call_operand.vmem [shape: f32[32], index: 2, kind: input, shape index: {}]   ;;  %s800_s3 = inlined_call_operand.vmem [shape: f32[32], index: 3, kind: input, shape index: {}]   ;;  %s801_s4 = inlined_call_operand.hbm [shape: f32[8,128], index: 4, kind: output, shape index: {}]  }
   0x1   :  { %10 = vsyncpa [#allocation5], 0 }
   0x2   :  { %11 = vsyncpa [#allocation6], 0 }
   0x3   :  { %12 = vsyncpa [#allocation10], 0 }
   0x4   :  { %13 = vsyncpa [#allocation4], 0  ;;  %s19_s17 = sshll.u32 %s797_s0, 4  ;;  %s634_s18 = smov [#allocation2]   ;;  %s20_s17 = int_to_ptr.hbm [resolvable:$true] %s19_s17 }
   0x5   :  { %s21_s19 = sshll.u32 %s634_s18, 4  ;;  %s30_s22 = sshll.u32 %s798_s1, 4  ;;  %s22_s19 = int_to_ptr.vmem [resolvable:$true] %s21_s19  ;;  %s31_s22 = int_to_ptr.hbm [resolvable:$true] %s30_s22 }
   0x6   :  { %24 = dma.hbm_to_vmem [thread:$0]  %s20_s17, 128, %s22_s19, [#allocation3]  }
   0x7   :  { %s635_s23 = smov [#allocation7]   ;;  %s39_s26 = sshll.u32 %s799_s2, 4  ;;  %s40_s26 = int_to_ptr.vmem [resolvable:$true] %s39_s26 }
   0x8   :  { %33 = dma.hbm_to_smem %s31_s22, 16, %s635_s23, [#allocation5]  }
   0x9   :  { %s48_s0 = sshll.u32 %s800_s3, 4  ;;  %s636_s29 = smov [#allocation8]   ;;  %s49_s0 = int_to_ptr.vmem [resolvable:$true] %s48_s0 }
   0xa   :  { %42 = dma.vmem_to_smem %s40_s26, 16, %s636_s29, [#allocation6]  }
   0xb   :  { %s637_s30 = smov [#allocation9]  }
   0xc   :  { %51 = dma.vmem_to_smem %s49_s0, 16, %s637_s30, [#allocation10]  }
   0xd   :  { %624 = dma.done.wait [#allocation3], 128  }
   0xe   :  { %625 = vsyncadd [#allocation3], 4294967168 }
   0xf   :  { %626 = dma.done.wait [#allocation5], 16  }
  0x10   :  { %627 = vsyncadd [#allocation5], 4294967280 }
  0x11   :  { %628 = dma.done.wait [#allocation6], 16  }
  0x12   :  { %629 = vsyncadd [#allocation6], 4294967280 }
  0x13   :  { %630 = dma.done.wait [#allocation10], 16  }
  0x14   :  { %631 = vsyncadd [#allocation10], 4294967280 }
  0x15   :  { %68 = sfence }
  0x16   :  { %s71_s1 = sld [smem:[#allocation7]]  ;;  %v676_v0 = vld [vmem:[#allocation2] sm:$0xff] }
  0x17   :  { %s74_s2 = sld [smem:[#allocation8]] }
  0x18   :  { %s70_s5 = sld [smem:[#allocation9]] }
  0x19   :  { %s443_s6 = sld [smem:[#allocation7 + $0x1]] }
  0x1a   :  { %s444_s3 = sld [smem:[#allocation8 + $0x1]] }
  0x1b   :  { %s442_s7 = sld [smem:[#allocation9 + $0x1]] }
  0x1c   :  { %v72_v1 = vstv %s71_s1  ;;  %s446_s8 = sld [smem:[#allocation7 + $0x2]] }
  0x1d   :  { %v73_v2 = vmul.f32 %v72_v1, %v676_v0  ;;  %v75_v3 = vstv %s74_s2  ;;  %s447_s9 = sld [smem:[#allocation8 + $0x2]] }
  0x1e   :  { %s679_s10 = sld [smem:[#allocation9 + $0x2]]  ;;  %v78_v9 = vstv %s70_s5 }
  0x1f   :  { %v76_v4 = vadd.f32 %v75_v3, %v73_v2  ;;  %v82_v5 = vstv %s443_s6  ;;  %s449_s11 = sld [smem:[#allocation7 + $0x3]] }
  0x20   :  { %v83_v6 = vmul.f32 %v82_v5, %v676_v0  ;;  %v85_v7 = vstv %s444_s3  ;;  %s450_s12 = sld [smem:[#allocation8 + $0x3]] }
  0x21   :  { %v77_v8 = vmax.f32 %v76_v4, 0.0  ;;  %s682_s13 = sld [smem:[#allocation9 + $0x3]]  ;;  %v88_v12 = vstv %s442_s7 }
  0x22   :  { %v86_v10 = vadd.f32 %v85_v7, %v83_v6  ;;  %v93_v11 = vstv %s446_s8  ;;  %s452_s14 = sld [smem:[#allocation7 + $0x4]] }
  0x23   :  { %v94_v13 = vmul.f32 %v93_v11, %v676_v0  ;;  %v96_v14 = vstv %s447_s9  ;;  %s453_s15 = sld [smem:[#allocation8 + $0x4]]  ;;  %v79_v15 = vmul.f32 %v78_v9, %v77_v8 }
  0x24   :  { %v87_v16 = vmax.f32 %v86_v10, 0.0  ;;  %s685_s16 = sld [smem:[#allocation9 + $0x4]]  ;;  %v99_v20 = vstv %s679_s10 }
  0x25   :  { %v97_v17 = vadd.f32 %v96_v14, %v94_v13  ;;  %v104_v18 = vstv %s449_s11  ;;  %s455_s17 = sld [smem:[#allocation7 + $0x5]] }
  0x26   :  { %v89_v19 = vmul.f32 %v88_v12, %v87_v16  ;;  %v105_v21 = vmul.f32 %v104_v18, %v676_v0  ;;  %v107_v22 = vstv %s450_s12  ;;  %s456_s18 = sld [smem:[#allocation8 + $0x5]] }
  0x27   :  { %v98_v23 = vmax.f32 %v97_v17, 0.0  ;;  %s689_s19 = sld [smem:[#allocation9 + $0x5]]  ;;  %v110_v28 = vstv %s682_s13 }
  0x28   :  { %v90_v24 = vadd.f32 %v89_v19, %v79_v15  ;;  %v108_v25 = vadd.f32 %v107_v22, %v105_v21  ;;  %v115_v26 = vstv %s452_s14  ;;  %s458_s20 = sld [smem:[#allocation7 + $0x6]] }
  0x29   :  { %v100_v27 = vmul.f32 %v99_v20, %v98_v23  ;;  %v116_v29 = vmul.f32 %v115_v26, %v676_v0  ;;  %v118_v30 = vstv %s453_s15  ;;  %s459_s21 = sld [smem:[#allocation8 + $0x6]] }
  0x2a   :  { %v109_v31 = vmax.f32 %v108_v25, 0.0  ;;  %s693_s22 = sld [smem:[#allocation9 + $0x6]]  ;;  %v121_v36 = vstv %s685_s16 }
  0x2b   :  { %v101_v32 = vadd.f32 %v100_v27, %v90_v24  ;;  %v119_v33 = vadd.f32 %v118_v30, %v116_v29  ;;  %v126_v34 = vstv %s455_s17  ;;  %s461_s23 = sld [smem:[#allocation7 + $0x7]] }
  0x2c   :  { %v111_v35 = vmul.f32 %v110_v28, %v109_v31  ;;  %v127_v37 = vmul.f32 %v126_v34, %v676_v0  ;;  %v129_v38 = vstv %s456_s18  ;;  %s462_s24 = sld [smem:[#allocation8 + $0x7]] }
  0x2d   :  { %v120_v39 = vmax.f32 %v119_v33, 0.0  ;;  %s697_s25 = sld [smem:[#allocation9 + $0x7]]  ;;  %v132_v44 = vstv %s689_s19 }
  0x2e   :  { %v112_v40 = vadd.f32 %v111_v35, %v101_v32  ;;  %v130_v41 = vadd.f32 %v129_v38, %v127_v37  ;;  %v137_v42 = vstv %s458_s20  ;;  %s464_s26 = sld [smem:[#allocation7 + $0x8]] }
  0x2f   :  { %v122_v43 = vmul.f32 %v121_v36, %v120_v39  ;;  %v138_v45 = vmul.f32 %v137_v42, %v676_v0  ;;  %v140_v46 = vstv %s459_s21  ;;  %s465_s27 = sld [smem:[#allocation8 + $0x8]] }
  0x30   :  { %v131_v47 = vmax.f32 %v130_v41, 0.0  ;;  %s701_s28 = sld [smem:[#allocation9 + $0x8]]  ;;  %v143_v52 = vstv %s693_s22 }
  0x31   :  { %v123_v48 = vadd.f32 %v122_v43, %v112_v40  ;;  %v141_v49 = vadd.f32 %v140_v46, %v138_v45  ;;  %v148_v50 = vstv %s461_s23  ;;  %s467_s0 = sld [smem:[#allocation7 + $0x9]] }
  0x32   :  { %v133_v51 = vmul.f32 %v132_v44, %v131_v47  ;;  %v149_v53 = vmul.f32 %v148_v50, %v676_v0  ;;  %v151_v54 = vstv %s462_s24  ;;  %s468_s29 = sld [smem:[#allocation8 + $0x9]] }
  0x33   :  { %v142_v55 = vmax.f32 %v141_v49, 0.0  ;;  %s705_s30 = sld [smem:[#allocation9 + $0x9]]  ;;  %v154_v60 = vstv %s697_s25 }
  0x34   :  { %v134_v56 = vadd.f32 %v133_v51, %v123_v48  ;;  %v152_v57 = vadd.f32 %v151_v54, %v149_v53  ;;  %v159_v58 = vstv %s464_s26  ;;  %s470_s1 = sld [smem:[#allocation7 + $0xa]] }
  0x35   :  { %v144_v59 = vmul.f32 %v143_v52, %v142_v55  ;;  %v160_v61 = vmul.f32 %v159_v58, %v676_v0  ;;  %v162_v62 = vstv %s465_s27  ;;  %s471_s2 = sld [smem:[#allocation8 + $0xa]] }
  0x36   :  { %v153_v63 = vmax.f32 %v152_v57, 0.0  ;;  %s709_s5 = sld [smem:[#allocation9 + $0xa]]  ;;  %v165_v5 = vstv %s701_s28 }
  0x37   :  { %v145_v1 = vadd.f32 %v144_v59, %v134_v56  ;;  %v163_v2 = vadd.f32 %v162_v62, %v160_v61  ;;  %v170_v3 = vstv %s467_s0  ;;  %s473_s6 = sld [smem:[#allocation7 + $0xb]] }
  0x38   :  { %v155_v4 = vmul.f32 %v154_v60, %v153_v63  ;;  %v171_v6 = vmul.f32 %v170_v3, %v676_v0  ;;  %v173_v7 = vstv %s468_s29  ;;  %s474_s3 = sld [smem:[#allocation8 + $0xb]] }
  0x39   :  { %v164_v8 = vmax.f32 %v163_v2, 0.0  ;;  %s713_s7 = sld [smem:[#allocation9 + $0xb]]  ;;  %v176_v13 = vstv %s705_s30 }
  0x3a   :  { %v156_v9 = vadd.f32 %v155_v4, %v145_v1  ;;  %v174_v10 = vadd.f32 %v173_v7, %v171_v6  ;;  %v181_v11 = vstv %s470_s1  ;;  %s476_s8 = sld [smem:[#allocation7 + $0xc]] }
  0x3b   :  { %v166_v12 = vmul.f32 %v165_v5, %v164_v8  ;;  %v182_v14 = vmul.f32 %v181_v11, %v676_v0  ;;  %v184_v15 = vstv %s471_s2  ;;  %s477_s9 = sld [smem:[#allocation8 + $0xc]] }
  0x3c   :  { %v175_v16 = vmax.f32 %v174_v10, 0.0  ;;  %s717_s10 = sld [smem:[#allocation9 + $0xc]]  ;;  %v187_v21 = vstv %s709_s5 }
  0x3d   :  { %v167_v17 = vadd.f32 %v166_v12, %v156_v9  ;;  %v185_v18 = vadd.f32 %v184_v15, %v182_v14  ;;  %v192_v19 = vstv %s473_s6  ;;  %s479_s11 = sld [smem:[#allocation7 + $0xd]] }
  0x3e   :  { %v177_v20 = vmul.f32 %v176_v13, %v175_v16  ;;  %v193_v22 = vmul.f32 %v192_v19, %v676_v0  ;;  %v195_v23 = vstv %s474_s3  ;;  %s480_s12 = sld [smem:[#allocation8 + $0xd]] }
  0x3f   :  { %v186_v24 = vmax.f32 %v185_v18, 0.0  ;;  %s721_s13 = sld [smem:[#allocation9 + $0xd]]  ;;  %v198_v29 = vstv %s713_s7 }
  0x40   :  { %v178_v25 = vadd.f32 %v177_v20, %v167_v17  ;;  %v196_v26 = vadd.f32 %v195_v23, %v193_v22  ;;  %v203_v27 = vstv %s476_s8  ;;  %s482_s14 = sld [smem:[#allocation7 + $0xe]] }
  0x41   :  { %v188_v28 = vmul.f32 %v187_v21, %v186_v24  ;;  %v204_v30 = vmul.f32 %v203_v27, %v676_v0  ;;  %v206_v31 = vstv %s477_s9  ;;  %s483_s15 = sld [smem:[#allocation8 + $0xe]] }
  0x42   :  { %v197_v32 = vmax.f32 %v196_v26, 0.0  ;;  %s725_s16 = sld [smem:[#allocation9 + $0xe]]  ;;  %v209_v37 = vstv %s717_s10 }
  0x43   :  { %v189_v33 = vadd.f32 %v188_v28, %v178_v25  ;;  %v207_v34 = vadd.f32 %v206_v31, %v204_v30  ;;  %v214_v35 = vstv %s479_s11  ;;  %s485_s17 = sld [smem:[#allocation7 + $0xf]] }
  0x44   :  { %v199_v36 = vmul.f32 %v198_v29, %v197_v32  ;;  %v215_v38 = vmul.f32 %v214_v35, %v676_v0  ;;  %v217_v39 = vstv %s480_s12  ;;  %s486_s18 = sld [smem:[#allocation8 + $0xf]] }
  0x45   :  { %v208_v40 = vmax.f32 %v207_v34, 0.0  ;;  %s729_s19 = sld [smem:[#allocation9 + $0xf]]  ;;  %v220_v45 = vstv %s721_s13 }
  0x46   :  { %v200_v41 = vadd.f32 %v199_v36, %v189_v33  ;;  %v218_v42 = vadd.f32 %v217_v39, %v215_v38  ;;  %v225_v43 = vstv %s482_s14  ;;  %s488_s20 = sld [smem:[#allocation7 + $0x10]] }
  0x47   :  { %v210_v44 = vmul.f32 %v209_v37, %v208_v40  ;;  %v226_v46 = vmul.f32 %v225_v43, %v676_v0  ;;  %v228_v47 = vstv %s483_s15  ;;  %s489_s21 = sld [smem:[#allocation8 + $0x10]] }
  0x48   :  { %v219_v48 = vmax.f32 %v218_v42, 0.0  ;;  %s733_s22 = sld [smem:[#allocation9 + $0x10]]  ;;  %v231_v53 = vstv %s725_s16 }
  0x49   :  { %v211_v49 = vadd.f32 %v210_v44, %v200_v41  ;;  %v229_v50 = vadd.f32 %v228_v47, %v226_v46  ;;  %v236_v51 = vstv %s485_s17  ;;  %s491_s23 = sld [smem:[#allocation7 + $0x11]] }
  0x4a   :  { %v221_v52 = vmul.f32 %v220_v45, %v219_v48  ;;  %v237_v54 = vmul.f32 %v236_v51, %v676_v0  ;;  %v239_v55 = vstv %s486_s18  ;;  %s492_s24 = sld [smem:[#allocation8 + $0x11]] }
  0x4b   :  { %v230_v56 = vmax.f32 %v229_v50, 0.0  ;;  %s737_s25 = sld [smem:[#allocation9 + $0x11]]  ;;  %v242_v61 = vstv %s729_s19 }
  0x4c   :  { %v222_v57 = vadd.f32 %v221_v52, %v211_v49  ;;  %v240_v58 = vadd.f32 %v239_v55, %v237_v54  ;;  %v247_v59 = vstv %s488_s20  ;;  %s494_s26 = sld [smem:[#allocation7 + $0x12]] }
  0x4d   :  { %v232_v60 = vmul.f32 %v231_v53, %v230_v56  ;;  %v248_v62 = vmul.f32 %v247_v59, %v676_v0  ;;  %v250_v63 = vstv %s489_s21  ;;  %s495_s27 = sld [smem:[#allocation8 + $0x12]] }
  0x4e   :  { %v241_v1 = vmax.f32 %v240_v58, 0.0  ;;  %s741_s28 = sld [smem:[#allocation9 + $0x12]]  ;;  %v253_v6 = vstv %s733_s22 }
  0x4f   :  { %v233_v2 = vadd.f32 %v232_v60, %v222_v57  ;;  %v251_v3 = vadd.f32 %v250_v63, %v248_v62  ;;  %v258_v4 = vstv %s491_s23  ;;  %s497_s0 = sld [smem:[#allocation7 + $0x13]] }
  0x50   :  { %v243_v5 = vmul.f32 %v242_v61, %v241_v1  ;;  %v259_v7 = vmul.f32 %v258_v4, %v676_v0  ;;  %v261_v8 = vstv %s492_s24  ;;  %s498_s29 = sld [smem:[#allocation8 + $0x13]] }
  0x51   :  { %v252_v9 = vmax.f32 %v251_v3, 0.0  ;;  %s745_s30 = sld [smem:[#allocation9 + $0x13]]  ;;  %v264_v14 = vstv %s737_s25 }
  0x52   :  { %v244_v10 = vadd.f32 %v243_v5, %v233_v2  ;;  %v262_v11 = vadd.f32 %v261_v8, %v259_v7  ;;  %v269_v12 = vstv %s494_s26  ;;  %s500_s1 = sld [smem:[#allocation7 + $0x14]] }
  0x53   :  { %v254_v13 = vmul.f32 %v253_v6, %v252_v9  ;;  %v270_v15 = vmul.f32 %v269_v12, %v676_v0  ;;  %v272_v16 = vstv %s495_s27  ;;  %s501_s2 = sld [smem:[#allocation8 + $0x14]] }
  0x54   :  { %v263_v17 = vmax.f32 %v262_v11, 0.0  ;;  %s749_s5 = sld [smem:[#allocation9 + $0x14]]  ;;  %v275_v22 = vstv %s741_s28 }
  0x55   :  { %v255_v18 = vadd.f32 %v254_v13, %v244_v10  ;;  %v273_v19 = vadd.f32 %v272_v16, %v270_v15  ;;  %v280_v20 = vstv %s497_s0  ;;  %s503_s6 = sld [smem:[#allocation7 + $0x15]] }
  0x56   :  { %v265_v21 = vmul.f32 %v264_v14, %v263_v17  ;;  %v281_v23 = vmul.f32 %v280_v20, %v676_v0  ;;  %v283_v24 = vstv %s498_s29  ;;  %s504_s3 = sld [smem:[#allocation8 + $0x15]] }
  0x57   :  { %v274_v25 = vmax.f32 %v273_v19, 0.0  ;;  %s753_s7 = sld [smem:[#allocation9 + $0x15]]  ;;  %v286_v30 = vstv %s745_s30 }
  0x58   :  { %v266_v26 = vadd.f32 %v265_v21, %v255_v18  ;;  %v284_v27 = vadd.f32 %v283_v24, %v281_v23  ;;  %v291_v28 = vstv %s500_s1  ;;  %s506_s8 = sld [smem:[#allocation7 + $0x16]] }
  0x59   :  { %v276_v29 = vmul.f32 %v275_v22, %v274_v25  ;;  %v292_v31 = vmul.f32 %v291_v28, %v676_v0  ;;  %v294_v32 = vstv %s501_s2  ;;  %s507_s9 = sld [smem:[#allocation8 + $0x16]] }
  0x5a   :  { %v285_v33 = vmax.f32 %v284_v27, 0.0  ;;  %s757_s10 = sld [smem:[#allocation9 + $0x16]]  ;;  %v297_v38 = vstv %s749_s5 }
  0x5b   :  { %v277_v34 = vadd.f32 %v276_v29, %v266_v26  ;;  %v295_v35 = vadd.f32 %v294_v32, %v292_v31  ;;  %v302_v36 = vstv %s503_s6  ;;  %s509_s11 = sld [smem:[#allocation7 + $0x17]] }
  0x5c   :  { %v287_v37 = vmul.f32 %v286_v30, %v285_v33  ;;  %v303_v39 = vmul.f32 %v302_v36, %v676_v0  ;;  %v305_v40 = vstv %s504_s3  ;;  %s510_s12 = sld [smem:[#allocation8 + $0x17]] }
  0x5d   :  { %v296_v41 = vmax.f32 %v295_v35, 0.0  ;;  %s761_s13 = sld [smem:[#allocation9 + $0x17]]  ;;  %v308_v46 = vstv %s753_s7 }
  0x5e   :  { %v288_v42 = vadd.f32 %v287_v37, %v277_v34  ;;  %v306_v43 = vadd.f32 %v305_v40, %v303_v39  ;;  %v313_v44 = vstv %s506_s8  ;;  %s512_s14 = sld [smem:[#allocation7 + $0x18]]  ;;  %s638_s8 = smov [#allocation11]  }
  0x5f   :  { %v298_v45 = vmul.f32 %v297_v38, %v296_v41  ;;  %v314_v47 = vmul.f32 %v313_v44, %v676_v0  ;;  %v316_v48 = vstv %s507_s9  ;;  %s513_s15 = sld [smem:[#allocation8 + $0x18]]  ;;  %s427_s9 = sshll.u32 %s638_s8, 4  ;;  %s428_s9 = int_to_ptr.vmem [resolvable:$true] %s427_s9 }
  0x60   :  { %v307_v49 = vmax.f32 %v306_v43, 0.0  ;;  %s765_s16 = sld [smem:[#allocation9 + $0x18]]  ;;  %v319_v54 = vstv %s757_s10 }
  0x61   :  { %v299_v50 = vadd.f32 %v298_v45, %v288_v42  ;;  %v317_v51 = vadd.f32 %v316_v48, %v314_v47  ;;  %v324_v52 = vstv %s509_s11  ;;  %s515_s17 = sld [smem:[#allocation7 + $0x19]] }
  0x62   :  { %v309_v53 = vmul.f32 %v308_v46, %v307_v49  ;;  %v325_v55 = vmul.f32 %v324_v52, %v676_v0  ;;  %v327_v56 = vstv %s510_s12  ;;  %s516_s18 = sld [smem:[#allocation8 + $0x19]]  ;;  %s429_s12 = sshll.u32 %s801_s4, 4  ;;  %s430_s12 = int_to_ptr.hbm [resolvable:$true] %s429_s12 }
  0x63   :  { %v318_v57 = vmax.f32 %v317_v51, 0.0  ;;  %s769_s19 = sld [smem:[#allocation9 + $0x19]]  ;;  %v330_v62 = vstv %s761_s13 }
  0x64   :  { %v310_v58 = vadd.f32 %v309_v53, %v299_v50  ;;  %v328_v59 = vadd.f32 %v327_v56, %v325_v55  ;;  %v335_v60 = vstv %s512_s14  ;;  %s518_s20 = sld [smem:[#allocation7 + $0x1a]] }
  0x65   :  { %v320_v61 = vmul.f32 %v319_v54, %v318_v57  ;;  %v336_v63 = vmul.f32 %v335_v60, %v676_v0  ;;  %v338_v1 = vstv %s513_s15  ;;  %s519_s21 = sld [smem:[#allocation8 + $0x1a]] }
  0x66   :  { %v329_v2 = vmax.f32 %v328_v59, 0.0  ;;  %s773_s22 = sld [smem:[#allocation9 + $0x1a]]  ;;  %v341_v7 = vstv %s765_s16 }
  0x67   :  { %v321_v3 = vadd.f32 %v320_v61, %v310_v58  ;;  %v339_v4 = vadd.f32 %v338_v1, %v336_v63  ;;  %v346_v5 = vstv %s515_s17  ;;  %s521_s23 = sld [smem:[#allocation7 + $0x1b]] }
  0x68   :  { %v331_v6 = vmul.f32 %v330_v62, %v329_v2  ;;  %v347_v8 = vmul.f32 %v346_v5, %v676_v0  ;;  %v349_v9 = vstv %s516_s18  ;;  %s522_s24 = sld [smem:[#allocation8 + $0x1b]] }
  0x69   :  { %v340_v10 = vmax.f32 %v339_v4, 0.0  ;;  %s777_s25 = sld [smem:[#allocation9 + $0x1b]]  ;;  %v352_v15 = vstv %s769_s19 }
  0x6a   :  { %v332_v11 = vadd.f32 %v331_v6, %v321_v3  ;;  %v350_v12 = vadd.f32 %v349_v9, %v347_v8  ;;  %v357_v13 = vstv %s518_s20  ;;  %s524_s26 = sld [smem:[#allocation7 + $0x1c]] }
  0x6b   :  { %v342_v14 = vmul.f32 %v341_v7, %v340_v10  ;;  %v358_v16 = vmul.f32 %v357_v13, %v676_v0  ;;  %v360_v17 = vstv %s519_s21  ;;  %s525_s27 = sld [smem:[#allocation8 + $0x1c]] }
  0x6c   :  { %v351_v18 = vmax.f32 %v350_v12, 0.0  ;;  %s781_s28 = sld [smem:[#allocation9 + $0x1c]]  ;;  %v363_v23 = vstv %s773_s22 }
  0x6d   :  { %v343_v19 = vadd.f32 %v342_v14, %v332_v11  ;;  %v361_v20 = vadd.f32 %v360_v17, %v358_v16  ;;  %v368_v21 = vstv %s521_s23  ;;  %s527_s0 = sld [smem:[#allocation7 + $0x1d]] }
  0x6e   :  { %v353_v22 = vmul.f32 %v352_v15, %v351_v18  ;;  %v369_v24 = vmul.f32 %v368_v21, %v676_v0  ;;  %v371_v25 = vstv %s522_s24  ;;  %s528_s29 = sld [smem:[#allocation8 + $0x1d]] }
  0x6f   :  { %v362_v26 = vmax.f32 %v361_v20, 0.0  ;;  %s785_s30 = sld [smem:[#allocation9 + $0x1d]]  ;;  %v374_v31 = vstv %s777_s25 }
  0x70   :  { %v354_v27 = vadd.f32 %v353_v22, %v343_v19  ;;  %v372_v28 = vadd.f32 %v371_v25, %v369_v24  ;;  %v379_v29 = vstv %s524_s26  ;;  %s530_s1 = sld [smem:[#allocation7 + $0x1e]] }
  0x71   :  { %v364_v30 = vmul.f32 %v363_v23, %v362_v26  ;;  %v380_v32 = vmul.f32 %v379_v29, %v676_v0  ;;  %v382_v33 = vstv %s525_s27  ;;  %s531_s2 = sld [smem:[#allocation8 + $0x1e]] }
  0x72   :  { %v373_v34 = vmax.f32 %v372_v28, 0.0  ;;  %s529_s5 = sld [smem:[#allocation9 + $0x1e]]  ;;  %v385_v39 = vstv %s781_s28 }
  0x73   :  { %v365_v35 = vadd.f32 %v364_v30, %v354_v27  ;;  %v383_v36 = vadd.f32 %v382_v33, %v380_v32  ;;  %v390_v37 = vstv %s527_s0  ;;  %s533_s6 = sld [smem:[#allocation7 + $0x1f]] }
  0x74   :  { %v375_v38 = vmul.f32 %v374_v31, %v373_v34  ;;  %v391_v40 = vmul.f32 %v390_v37, %v676_v0  ;;  %v393_v41 = vstv %s528_s29  ;;  %s534_s3 = sld [smem:[#allocation8 + $0x1f]] }
  0x75   :  { %v384_v42 = vmax.f32 %v383_v36, 0.0  ;;  %s532_s7 = sld [smem:[#allocation9 + $0x1f]]  ;;  %v396_v47 = vstv %s785_s30 }
  0x76   :  { %v376_v43 = vadd.f32 %v375_v38, %v365_v35  ;;  %v394_v44 = vadd.f32 %v393_v41, %v391_v40  ;;  %v401_v45 = vstv %s530_s1 }
  0x77   :  { %v386_v46 = vmul.f32 %v385_v39, %v384_v42  ;;  %v402_v48 = vmul.f32 %v401_v45, %v676_v0  ;;  %v404_v49 = vstv %s531_s2 }
  0x78   :  { %v395_v50 = vmax.f32 %v394_v44, 0.0  ;;  %v407_v55 = vstv %s529_s5 }
  0x79   :  { %v387_v51 = vadd.f32 %v386_v46, %v376_v43  ;;  %v405_v52 = vadd.f32 %v404_v49, %v402_v48  ;;  %v412_v53 = vstv %s533_s6 }
  0x7a   :  { %v397_v54 = vmul.f32 %v396_v47, %v395_v50  ;;  %v413_v56 = vmul.f32 %v412_v53, %v676_v0  ;;  %v415_v57 = vstv %s534_s3 }
  0x7b   :  { %v406_v58 = vmax.f32 %v405_v52, 0.0  ;;  %v418_v62 = vstv %s532_s7 }
  0x7c   :  { %v398_v59 = vadd.f32 %v397_v54, %v387_v51  ;;  %v416_v60 = vadd.f32 %v415_v57, %v413_v56 }
  0x7d   :  { %v408_v61 = vmul.f32 %v407_v55, %v406_v58 }
  0x7e   :  { %v417_v63 = vmax.f32 %v416_v60, 0.0 }
  0x7f   :  { %v409_v1 = vadd.f32 %v408_v61, %v398_v59 }
  0x80   :  { %v419_v2 = vmul.f32 %v418_v62, %v417_v63 }
  0x82   :  { %v420_v3 = vadd.f32 %v419_v2, %v409_v1 }
  0x84   :  { %421 = vst [vmem:[#allocation11] sm:$0xff] %v420_v3 }
  0x85   :  { %432 = dma.vmem_to_hbm [thread:$0]  %s428_s9, 128, %s430_s12, [#allocation4]  }
  0x86   :  { %632 = dma.done.wait [#allocation4], 128  }
  0x87   :  { %633 = vsyncadd [#allocation4], 4294967168 }
  0x88   :  { %437 = vsyncpa [#allocation3], 1 }
  0x89   :  { %438 = vsyncpa [#allocation4], 1 }
  0x8a   :  { %439 = vsyncpa [#allocation5], 1 }
  0x8b   :  { %440 = vsyncpa [#allocation6], 1 }
  0x8c   :  { %441 = vsyncpa [#allocation10], 1 }

</bundles_post_ra>
